<compile_context>
chip_gen: v7x
topology: tpu7x:2x2x1
jax: 0.10.0
libtpu: 0.0.40
codegen_flags: <defaults>
</compile_context>

<pallas_src>
import functools

import jax
import jax.numpy as jnp
from jax.experimental import pallas as pl
from jax.experimental.pallas import tpu as pltpu

HIDDEN = 16
SUBLANE = 8


def _round_up(x, m):
    return (x + m - 1) // m * m


def prepare_params(params, hidden=HIDDEN):
    """One-time packing of w1..w4 / b1..b4 into a single f32 slab.

    Row layout (all segment offsets 8-aligned so in-kernel static slices never
    cross sublane-tile boundaries):
      [0        : in_dim      , :hidden ]  w1
      [r1       : r1 + hidden , :hidden ]  w2
      [r2       : r2 + hidden , :hidden ]  w3
      [r3       : r3 + hidden , :out_dim]  w4
      [r4 + k   ,              :width   ]  b1..b4  (k = 0..3)
    Returns (slab, out_dim).
    """
    w1, w2, w3, w4 = params["w1"], params["w2"], params["w3"], params["w4"]
    b1, b2, b3, b4 = params["b1"], params["b2"], params["b3"], params["b4"]
    in_dim = w1.shape[0]
    out_dim = w4.shape[1]
    width = max(hidden, out_dim)

    r1 = _round_up(in_dim, SUBLANE)
    r2 = r1 + _round_up(hidden, SUBLANE)
    r3 = r2 + _round_up(hidden, SUBLANE)
    r4 = r3 + _round_up(hidden, SUBLANE)
    rows = _round_up(r4 + 4, SUBLANE)

    slab = jnp.zeros((rows, width), jnp.float32)
    slab = slab.at[0:in_dim, :hidden].set(w1.astype(jnp.float32))
    slab = slab.at[r1:r1 + hidden, :hidden].set(w2.astype(jnp.float32))
    slab = slab.at[r2:r2 + hidden, :hidden].set(w3.astype(jnp.float32))
    slab = slab.at[r3:r3 + hidden, :out_dim].set(w4.astype(jnp.float32))
    slab = slab.at[r4 + 0, :hidden].set(b1.reshape(-1).astype(jnp.float32))
    slab = slab.at[r4 + 1, :hidden].set(b2.reshape(-1).astype(jnp.float32))
    slab = slab.at[r4 + 2, :hidden].set(b3.reshape(-1).astype(jnp.float32))
    slab = slab.at[r4 + 3, :out_dim].set(b4.reshape(-1).astype(jnp.float32))
    return jax.device_put(slab), out_dim


def _actor_kernel(x_ref, p_ref, out_ref, *, in_dim, hidden, out_dim, offs):
    r1, r2, r3, r4 = offs
    # Static slices of the VMEM-resident param slab (zero-cost views).
    w1 = p_ref[0:in_dim, :hidden]
    w2 = p_ref[r1:r1 + hidden, :hidden]
    w3 = p_ref[r2:r2 + hidden, :hidden]
    w4 = p_ref[r3:r3 + hidden, :out_dim]
    b1 = p_ref[r4 + 0:r4 + 1, :hidden]
    b2 = p_ref[r4 + 1:r4 + 2, :hidden]
    b3 = p_ref[r4 + 2:r4 + 3, :hidden]
    b4 = p_ref[r4 + 3:r4 + 4, :out_dim]

    h = jnp.dot(x_ref[...], w1, preferred_element_type=jnp.float32)
    h = jnp.maximum(h + b1, 0.0)
    h = jnp.dot(h, w2, preferred_element_type=jnp.float32)
    h = jnp.maximum(h + b2, 0.0)
    h = jnp.dot(h, w3, preferred_element_type=jnp.float32)
    h = jnp.maximum(h + b3, 0.0)
    h = jnp.dot(h, w4, preferred_element_type=jnp.float32)
    out_ref[...] = (h + b4).astype(out_ref.dtype)


@functools.partial(jax.jit, static_argnames=("out_dim", "hidden", "block_rows"))
def actor_forward(state, param_slab, *, out_dim, hidden=HIDDEN, block_rows=1024):
    """state: (B, input_dim) f32. param_slab: output of prepare_params."""
    B, in_dim = state.shape

    r1 = _round_up(in_dim, SUBLANE)
    r2 = r1 + _round_up(hidden, SUBLANE)
    r3 = r2 + _round_up(hidden, SUBLANE)
    r4 = r3 + _round_up(hidden, SUBLANE)

    # Batch tiling:
    #   * guarantee >=2 grid steps once B >= 16 so the "parallel" axis can be
    #     split across v7x's two TensorCores (no-op on single-TC v5e/v6e);
    #   * otherwise size tiles near block_rows to amortize per-step overhead
    #     while minimizing tail padding.
    n_steps = max(pl.cdiv(B, block_rows), 2 if B >= 16 else 1)
    tb = _round_up(pl.cdiv(B, n_steps), SUBLANE)
    bp = tb * n_steps
    if bp != B:
        state = jnp.pad(state, ((0, bp - B), (0, 0)))

    kernel = functools.partial(
        _actor_kernel, in_dim=in_dim, hidden=hidden, out_dim=out_dim,
        offs=(r1, r2, r3, r4))

    out = pl.pallas_call(
        kernel,
        out_shape=jax.ShapeDtypeStruct((bp, out_dim), jnp.float32),
        grid=(n_steps,),
        in_specs=[
            pl.BlockSpec((tb, in_dim), lambda i: (i, 0)),
            # Constant (0,0) block index -> fetched once, stays VMEM-resident.
            pl.BlockSpec(param_slab.shape, lambda i: (0, 0)),
        ],
        # Compact output: block second dim equals the full array dim, so the
        # (8,128) rule is satisfied; masked store but ~32x less HBM writeback
        # than lane-padding out_dim to 128.
        out_specs=pl.BlockSpec((tb, out_dim), lambda i: (i, 0)),
        compiler_params=pltpu.CompilerParams(
            dimension_semantics=("parallel",)),
    )(state, param_slab)

    return out[:B]


def init_actor_params(key, input_dim, output_dim, hidden=HIDDEN):
    """Deterministic synthetic init (uniform, roughly matching torch Linear scale)."""
    ks = jax.random.split(key, 8)

    def lin(kw, kb, fan_in, fan_out):
        bound = 1.0 / jnp.sqrt(fan_in)
        w = jax.random.uniform(kw, (fan_in, fan_out), jnp.float32, -bound, bound)
        b = jax.random.uniform(kb, (1, fan_out), jnp.float32, -bound, bound)
        return w, b

    w1, b1 = lin(ks[0], ks[1], input_dim, hidden)
    w2, b2 = lin(ks[2], ks[3], hidden, hidden)
    w3, b3 = lin(ks[4], ks[5], hidden, hidden)
    w4, b4 = lin(ks[6], ks[7], hidden, output_dim)
    return dict(w1=w1, b1=b1, w2=w2, b2=b2, w3=w3, b3=b3, w4=w4, b4=b4)


def actor_forward_ref(state, p):
    """Pure-JAX reference for correctness checking."""
    h = jnp.maximum(state @ p["w1"] + p["b1"], 0.0)
    h = jnp.maximum(h @ p["w2"] + p["b2"], 0.0)
    h = jnp.maximum(h @ p["w3"] + p["b3"], 0.0)
    return h @ p["w4"] + p["b4"]


if __name__ == "__main__":
    key = jax.random.PRNGKey(0)
    k_params, k_small, k_big = jax.random.split(key, 3)

    input_dim, output_dim = 32, 4
    params = init_actor_params(k_params, input_dim, output_dim)
    param_slab, out_dim = prepare_params(params)   # one-time packing

    # Small batch (typical RL usage; launch/overhead-bound path, grid=(1,)).
    state_small = jax.random.normal(k_small, (8, input_dim), jnp.float32)
    out_small = jax.block_until_ready(
        actor_forward(state_small, param_slab, out_dim=out_dim))
    ref_small = actor_forward_ref(state_small, params)
    assert out_small.shape == (8, output_dim)
    assert jnp.allclose(out_small, ref_small, atol=1e-5, rtol=1e-5), "mismatch (B=8)"

    # Larger, non-tile-multiple batch exercises the multi-step grid + pad/slice path.
    state_big = jax.random.normal(k_big, (1000, input_dim), jnp.float32)
    out_big = jax.block_until_ready(
        actor_forward(state_big, param_slab, out_dim=out_dim))
    ref_big = actor_forward_ref(state_big, params)
    assert out_big.shape == (1000, output_dim)
    assert jnp.allclose(out_big, ref_big, atol=1e-5, rtol=1e-5), "mismatch (B=1000)"

    print("KERNEL_OK")
</pallas_src>

<mosaic_0001>
module attributes {stable_mosaic.version = 11 : i64} {
  func.func @_actor_kernel(%arg0: i32, %arg1: memref<8x32xf32, #tpu.memory_space<vmem>>, %arg2: memref<88x16xf32, #tpu.memory_space<vmem>>, %arg3: memref<8x4xf32, #tpu.memory_space<vmem>>) attributes {dimension_semantics = [#tpu.dimension_semantics<parallel>], iteration_bounds = array<i64: 1>, scalar_prefetch = 0 : i64, scratch_operands = 0 : i64, tpu.core_type = #tpu.core_type<tc>, window_params = [{transform_indices = @transform_0, window_bounds = array<i64: 8, 32>}, {pipeline_mode = #tpu.pipeline_mode<synchronous>, transform_indices = @transform_1, window_bounds = array<i64: 88, 16>}, {transform_indices = @transform_2, window_bounds = array<i64: 8, 4>}]} {
    %c0 = arith.constant 0 : index
    %c0_0 = arith.constant 0 : index
    %0 = vector.load %arg2[%c0, %c0_0] : memref<88x16xf32, #tpu.memory_space<vmem>>, vector<32x16xf32>
    %c32 = arith.constant 32 : index
    %c0_1 = arith.constant 0 : index
    %1 = vector.load %arg2[%c32, %c0_1] : memref<88x16xf32, #tpu.memory_space<vmem>>, vector<16x16xf32>
    %c48 = arith.constant 48 : index
    %c0_2 = arith.constant 0 : index
    %2 = vector.load %arg2[%c48, %c0_2] : memref<88x16xf32, #tpu.memory_space<vmem>>, vector<16x16xf32>
    %c64 = arith.constant 64 : index
    %c0_3 = arith.constant 0 : index
    %3 = vector.load %arg2[%c64, %c0_3] : memref<88x16xf32, #tpu.memory_space<vmem>>, vector<16x4xf32>
    %c80 = arith.constant 80 : index
    %c0_4 = arith.constant 0 : index
    %4 = vector.load %arg2[%c80, %c0_4] : memref<88x16xf32, #tpu.memory_space<vmem>>, vector<1x16xf32>
    %c81 = arith.constant 81 : index
    %c0_5 = arith.constant 0 : index
    %5 = vector.load %arg2[%c81, %c0_5] : memref<88x16xf32, #tpu.memory_space<vmem>>, vector<1x16xf32>
    %c82 = arith.constant 82 : index
    %c0_6 = arith.constant 0 : index
    %6 = vector.load %arg2[%c82, %c0_6] : memref<88x16xf32, #tpu.memory_space<vmem>>, vector<1x16xf32>
    %c83 = arith.constant 83 : index
    %c0_7 = arith.constant 0 : index
    %7 = vector.load %arg2[%c83, %c0_7] : memref<88x16xf32, #tpu.memory_space<vmem>>, vector<1x4xf32>
    %c0_8 = arith.constant 0 : index
    %c0_9 = arith.constant 0 : index
    %8 = vector.load %arg1[%c0_8, %c0_9] : memref<8x32xf32, #tpu.memory_space<vmem>>, vector<8x32xf32>
    %cst = arith.constant dense<0.000000e+00> : vector<8x16xf32>
    %9 = tpu.matmul %8, %0, %cst {dimension_numbers = #tpu.dot_dimension_numbers<[1], [0], [0], [1], [0, 0, 1, 1], [], []>} : vector<8x32xf32>, vector<32x16xf32>, vector<8x16xf32> -> vector<8x16xf32>
    %10 = vector.broadcast %4 : vector<1x16xf32> to vector<8x16xf32>
    %11 = arith.addf %9, %10 : vector<8x16xf32>
    %cst_10 = arith.constant 0.000000e+00 : f32
    %12 = vector.broadcast %cst_10 : f32 to vector<8x16xf32>
    %13 = arith.maximumf %11, %12 : vector<8x16xf32>
    %cst_11 = arith.constant dense<0.000000e+00> : vector<8x16xf32>
    %14 = tpu.matmul %13, %1, %cst_11 {dimension_numbers = #tpu.dot_dimension_numbers<[1], [0], [0], [1], [0, 0, 1, 1], [], []>} : vector<8x16xf32>, vector<16x16xf32>, vector<8x16xf32> -> vector<8x16xf32>
    %15 = vector.broadcast %5 : vector<1x16xf32> to vector<8x16xf32>
    %16 = arith.addf %14, %15 : vector<8x16xf32>
    %cst_12 = arith.constant 0.000000e+00 : f32
    %17 = vector.broadcast %cst_12 : f32 to vector<8x16xf32>
    %18 = arith.maximumf %16, %17 : vector<8x16xf32>
    %cst_13 = arith.constant dense<0.000000e+00> : vector<8x16xf32>
    %19 = tpu.matmul %18, %2, %cst_13 {dimension_numbers = #tpu.dot_dimension_numbers<[1], [0], [0], [1], [0, 0, 1, 1], [], []>} : vector<8x16xf32>, vector<16x16xf32>, vector<8x16xf32> -> vector<8x16xf32>
    %20 = vector.broadcast %6 : vector<1x16xf32> to vector<8x16xf32>
    %21 = arith.addf %19, %20 : vector<8x16xf32>
    %cst_14 = arith.constant 0.000000e+00 : f32
    %22 = vector.broadcast %cst_14 : f32 to vector<8x16xf32>
    %23 = arith.maximumf %21, %22 : vector<8x16xf32>
    %cst_15 = arith.constant dense<0.000000e+00> : vector<8x4xf32>
    %24 = tpu.matmul %23, %3, %cst_15 {dimension_numbers = #tpu.dot_dimension_numbers<[1], [0], [0], [1], [0, 0, 1, 1], [], []>} : vector<8x16xf32>, vector<16x4xf32>, vector<8x4xf32> -> vector<8x4xf32>
    %25 = vector.broadcast %7 : vector<1x4xf32> to vector<8x4xf32>
    %26 = arith.addf %24, %25 : vector<8x4xf32>
    %c0_16 = arith.constant 0 : index
    %c0_17 = arith.constant 0 : index
    %27 = vector.load %arg3[%c0_16, %c0_17] : memref<8x4xf32, #tpu.memory_space<vmem>>, vector<8x4xf32>
    tpu.vector_store %arg3[%c0_16, %c0_17], %26 {strides = array<i32>} : memref<8x4xf32, #tpu.memory_space<vmem>>, vector<8x4xf32>,
    return
  }
  func.func @transform_0(%arg0: i32) -> (i32, i32) {
    %c0_i32 = arith.constant 0 : i32
    %c0_i32_0 = arith.constant 0 : i32
    return %arg0, %c0_i32 : i32, i32
  }
  func.func @transform_1(%arg0: i32) -> (i32, i32) {
    %c0_i32 = arith.constant 0 : i32
    %c0_i32_0 = arith.constant 0 : i32
    %c0_i32_1 = arith.constant 0 : i32
    return %c0_i32, %c0_i32_0 : i32, i32
  }
  func.func @transform_2(%arg0: i32) -> (i32, i32) {
    %c0_i32 = arith.constant 0 : i32
    %c0_i32_0 = arith.constant 0 : i32
    return %arg0, %c0_i32 : i32, i32
  }
}

</mosaic_0001>

<bundles_post_ra>
// kernel: actor_forward.1
= control target key start
LH: loop header
LB: loop body
LE: loop exit
PB: predicated region body
PF: predicated region fallthrough
CT: control target
= control target key end

     0   :  { %v417_v0 = vmov 0.0|0.0   ;;  %vm418_vm0 = vmmov 0   ;;  %v419_v4 = vmov 0.0   ;;  %vm30_vm1 = vcmask 261120   ;;  %s490_s1 = inlined_call_operand.vmem [shape: f32[88,16], index: 1, kind: input, shape index: {}]   ;;  %s491_s0 = inlined_call_operand.vmem [shape: f32[8,32], index: 0, kind: input, shape index: {}]   ;;  %s492_s2 = inlined_call_operand.vmem [shape: f32[8,4], index: 2, kind: output, shape index: {}]  }
   0x1   :  { %399 = vmatprep.subr.bf16.mxu0 %v417_v0  ;;  %v11_v1 = vld [vmem:[%s490_s1] sm:$0xff]  ;;  %v12_v2 = vld [vmem:[%s490_s1 + $0x8] sm:$0xff]  ;;  %v13_v3 = vld [vmem:[%s490_s1 + $0x10] sm:$0xff]  ;;  %375 = vmatprep.mubr.msk.f32.mxu0 %vm418_vm0, %v419_v4  ;;  %vm109_vm2 = vcmask 130048   ;;  %vm339_vm3 = vcmask 31744  }
   0x2   :  { %v400_v5 = vpack.c.bf16 %v12_v2, %v11_v1  ;;  %v14_v6 = vld [vmem:[%s490_s1 + $0x18] sm:$0xff]  ;;  %405 = vmatprep.subr.bf16.mxu1 %v417_v0  ;;  %382 = vmatprep.mubr.msk.f32.mxu1 %vm418_vm0, %v419_v4  ;;  %v25_v8 = vld [vmem:[%s491_s0] sm:$0xff]  ;;  %v16_v10 = vld [vmem:[%s490_s1 + $0x28] sm:$0xff] }
   0x3   :  { %v403_v7 = vpack.c.bf16 %v14_v6, %v13_v3  ;;  %v15_v9 = vld [vmem:[%s490_s1 + $0x20] sm:$0xff]  ;;  %v345_v12 = vld [vmem:[%s490_s1 + $0x50] ss:$0 sm:$0xff]  ;;  %v18_v18 = vld [vmem:[%s490_s1 + $0x38] sm:$0xff] }
   0x4   :  { %401 = vmatpush3.bf16.msra.mxu0 %v400_v5  ;;  %v406_v11 = vpack.c.bf16 %v16_v10, %v15_v9  ;;  %v17_v17 = vld [vmem:[%s490_s1 + $0x30] sm:$0xff]  ;;  %v19_v25 = vld [vmem:[%s490_s1 + $0x40] sm:$0xff]  ;;  %v20_v26 = vld [vmem:[%s490_s1 + $0x48] sm:$0xff] }
   0x5   :  { %402 = vmatprep.subr.bf16.mxu0 %v417_v0  ;;  %v409_v19 = vpack.c.bf16 %v18_v18, %v17_v17  ;;  %v347_v20 = vld [vmem:[%s490_s1 + $0x51] ss:$0 sm:$0xff]  ;;  %v412_v27 = vpack.c.bf16 %v20_v26, %v19_v25  ;;  %v349_v28 = vld [vmem:[%s490_s1 + $0x52] ss:$0 sm:$0xff]  ;;  %v351_v33 = vld [vmem:[%s490_s1 + $0x53] ss:$0 sm:$0xff] }
   0x6   :  { %407 = vmatpush3.bf16.msra.mxu1 %v406_v11 }
   0x7   :  { %408 = vmatprep.subr.bf16.mxu1 %v417_v0 }
   0x8   :  { %404 = vmatpush3.bf16.msra.mxu0 %v403_v7 }
   0x9   :  { %411 = vmatprep.subr.bf16.mxu0 %v417_v0 }
   0xb   :  { %376 = vmatmul.mubr.msk.f32.vlgmr.msra.gmra.mrb[0].mxu0 %vm30_vm1, %v25_v8 }
   0xc   :  { %396 = vmatprep.mubr.msk.f32.mxu0 %vm418_vm0, %v419_v4  ;;  %413 = vmatpush3.bf16.msra.mxu0 %v412_v27 }
  0xde   :  { %v100_v13 = vpop.f32.mrb[0].mxu0 }
  0xdf   :  { %v101_v14 = vadd.f32 %v345_v12, %v100_v13  ;;  %v377_v15 = vpop.f32.mrb[1].mxu0 }
  0xe1   :  { %v104_v16 = vmax.f32 %v101_v14, 0.0 }
  0xe3   :  { %383 = vmatmul.mubr.msk.f32.vlgmr.msra.gmra.mrb[0].mxu1 %vm109_vm2, %v104_v16 }
  0xe4   :  { %389 = vmatprep.mubr.msk.f32.mxu1 %vm418_vm0, %v419_v4  ;;  %410 = vmatpush3.bf16.msra.mxu1 %v409_v19 }
 0x1b6   :  { %v179_v21 = vpop.f32.mrb[0].mxu1 }
 0x1b7   :  { %v180_v22 = vadd.f32 %v347_v20, %v179_v21  ;;  %v384_v23 = vpop.f32.mrb[1].mxu1 }
 0x1b9   :  { %v183_v24 = vmax.f32 %v180_v22, 0.0 }
 0x1bb   :  { %390 = vmatmul.mubr.msk.f32.vlgmr.msra.gmra.mrb[2].mxu1 %vm109_vm2, %v183_v24 }
 0x28e   :  { %v257_v29 = vpop.f32.mrb[2].mxu1 }
 0x28f   :  { %v258_v30 = vadd.f32 %v349_v28, %v257_v29  ;;  %v391_v31 = vpop.f32.mrb[3].mxu1 }
 0x291   :  { %v261_v32 = vmax.f32 %v258_v30, 0.0 }
 0x293   :  { %397 = vmatmul.mubr.msk.f32.vlgmr.msra.gmra.mrb[2].mxu0 %vm109_vm2, %v261_v32 }
 0x366   :  { %v335_v34 = vpop.f32.mrb[2].mxu0 }
 0x367   :  { %v336_v35 = vadd.f32 %v351_v33, %v335_v34  ;;  %v398_v36 = vpop.f32.mrb[3].mxu0 }
 0x369   :  { %340 = vst.msk [vmem:[%s492_s2] sm:$0xff] %vm339_vm3, %v336_v35 }

</bundles_post_ra>
